<compile_context>
chip_gen: v5e
topology: v5e:2x2
jax: 0.10.0
libtpu: 0.0.40
codegen_flags: <defaults>
</compile_context>

<pallas_src>
import jax
import jax.numpy as jnp
from jax.experimental import pallas as pl
from jax.experimental.pallas import tpu as pltpu


def _round_up(x, m):
    return ((x + m - 1) // m) * m


def ncf_kernel(gmf_u_ref, gmf_i_ref, mlp_ref, w1_ref, b1_ref, w2f_ref, c_ref,
               out_ref):
    f32 = jnp.float32

    # --- GMF branch (VPU + XLU): user rows are pre-scaled by the GMF half of
    #     the final layer, so the contribution is a plain product + lane sum.
    gmf_prod = gmf_u_ref[...].astype(f32) * gmf_i_ref[...].astype(f32)  # (TB, E)
    gmf_contrib = jnp.sum(gmf_prod, axis=-1, keepdims=True)             # (TB, 1)

    # --- MLP branch: single K=2E matmul (MXU), ReLU, then the folded
    #     w2@wf_m vector turns the rest into a VPU multiply + lane sum.
    h = jnp.dot(mlp_ref[...], w1_ref[...],
                preferred_element_type=f32) + b1_ref[...]               # (TB, H)
    h = jnp.maximum(h, 0.0)
    mlp_contrib = jnp.sum(h * w2f_ref[...], axis=-1, keepdims=True)     # (TB, 1)

    out_ref[...] = gmf_contrib + mlp_contrib + c_ref[0]


def prepare_params(params, compute_dtype=jnp.bfloat16):
    """Fold / cast parameters once into the kernel-ready layout."""
    (gmf_user_emb, gmf_item_emb, mlp_user_emb, mlp_item_emb,
     w1, b1, w2, b2, wf, bf) = params
    E = gmf_user_emb.shape[1]

    wf_g = wf[:E, 0]                      # (E,)  GMF half of the final layer
    wf_m = wf[E:, 0]                      # (E,)  MLP half of the final layer

    # GMF: pre-scale the user table by wf_g in f32, then cast.
    gmf_user_scaled = (gmf_user_emb * wf_g[None, :]).astype(compute_dtype)

    # MLP tail fold (exact algebra, all linear after the ReLU):
    #   sum_e((h @ w2 + b2)_e * wf_m_e) + bf
    #     == h . (w2 @ wf_m) + (b2 . wf_m + bf)
    w2f = (w2 @ wf_m)[None, :]            # (1, H) f32
    const = jnp.dot(b2[0], wf_m) + bf[0, 0]

    return (
        gmf_user_scaled,                  # (U, E)  bf16 (pre-scaled by wf_g)
        gmf_item_emb.astype(compute_dtype),   # (I, E)  bf16
        mlp_user_emb.astype(compute_dtype),   # (U, E)  bf16
        mlp_item_emb.astype(compute_dtype),   # (I, E)  bf16
        w1.astype(compute_dtype),         # (2E, H) bf16
        b1,                               # (1, H)  f32
        w2f,                              # (1, H)  f32
        jnp.reshape(const, (1,)),         # (1,)    f32 scalar (SMEM)
    )


def ncf_forward(user, item, kparams, *, tb=1024):
    """NCF forward. user/item: int32 [B]. Returns float32 [B]."""
    (gmf_ue_s, gmf_ie, mlp_ue, mlp_ie, w1, b1, w2f, const) = kparams

    B = user.shape[0]
    E = gmf_ie.shape[1]
    K = w1.shape[0]          # 2E
    H = w1.shape[1]

    # Batch tiling: TB rows per grid step (multiple of 16 for bf16 sublane
    # packing), batch padded up to a multiple of TB; padded rows sliced off.
    TB = min(_round_up(tb, 16), _round_up(B, 16))
    B_pad = _round_up(B, TB)
    if B_pad != B:
        user = jnp.pad(user, (0, B_pad - B))
        item = jnp.pad(item, (0, B_pad - B))

    # Embedding lookups + MLP-half concat (XLA glue, bf16 rows).
    # TODO(synk): move the gathers into the kernel (see header note).
    gmf_u = jnp.take(gmf_ue_s, user, axis=0)                       # (B_pad, E)
    gmf_i = jnp.take(gmf_ie, item, axis=0)                         # (B_pad, E)
    mlp_cat = jnp.concatenate([jnp.take(mlp_ue, user, axis=0),
                               jnp.take(mlp_ie, item, axis=0)],
                              axis=-1)                             # (B_pad, 2E)

    emb_spec = pl.BlockSpec((TB, E), lambda i: (i, 0))
    mlp_spec = pl.BlockSpec((TB, K), lambda i: (i, 0))
    w1_spec = pl.BlockSpec((K, H), lambda i: (0, 0))
    b1_spec = pl.BlockSpec((1, H), lambda i: (0, 0))
    w2f_spec = pl.BlockSpec((1, H), lambda i: (0, 0))
    c_spec = pl.BlockSpec(memory_space=pltpu.MemorySpace.SMEM)
    out_spec = pl.BlockSpec((TB, 1), lambda i: (i, 0))

    out = pl.pallas_call(
        ncf_kernel,
        out_shape=jax.ShapeDtypeStruct((B_pad, 1), jnp.float32),
        grid_spec=pltpu.PrefetchScalarGridSpec(
            num_scalar_prefetch=0,
            grid=(B_pad // TB,),
            in_specs=[emb_spec, emb_spec, mlp_spec,
                      w1_spec, b1_spec, w2f_spec, c_spec],
            out_specs=out_spec,
        ),
        compiler_params=pltpu.CompilerParams(
            dimension_semantics=("parallel",)),
    )(gmf_u, gmf_i, mlp_cat, w1, b1, w2f, const)

    return out[:B, 0]  # torch .squeeze() on (B, 1) -> (B,)


def init_params(key, num_users, num_items, embed_size, hidden_size):
    """Deterministic synthetic parameter init (PyTorch-shaped, transposed to
    (in, out) layout)."""
    ks = jax.random.split(key, 10)
    f32 = jnp.float32

    gmf_user_emb = jax.random.normal(ks[0], (num_users, embed_size), f32) * 0.1
    gmf_item_emb = jax.random.normal(ks[1], (num_items, embed_size), f32) * 0.1
    mlp_user_emb = jax.random.normal(ks[2], (num_users, embed_size), f32) * 0.1
    mlp_item_emb = jax.random.normal(ks[3], (num_items, embed_size), f32) * 0.1

    # nn.Linear(embed_size*2, hidden_size): weight (H, 2E), bias (H,)
    w1_pt = jax.random.normal(ks[4], (hidden_size, 2 * embed_size), f32) * 0.1
    b1_pt = jax.random.normal(ks[5], (hidden_size,), f32) * 0.1
    # nn.Linear(hidden_size, embed_size): weight (E, H), bias (E,)
    w2_pt = jax.random.normal(ks[6], (embed_size, hidden_size), f32) * 0.1
    b2_pt = jax.random.normal(ks[7], (embed_size,), f32) * 0.1
    # final nn.Linear(embed_size*2, 1): weight (1, 2E), bias (1,)
    wf_pt = jax.random.normal(ks[8], (1, 2 * embed_size), f32) * 0.1
    bf_pt = jax.random.normal(ks[9], (1,), f32) * 0.1

    return (gmf_user_emb, gmf_item_emb, mlp_user_emb, mlp_item_emb,
            w1_pt.T, b1_pt.reshape(1, -1),
            w2_pt.T, b2_pt.reshape(1, -1),
            wf_pt.T, bf_pt.reshape(1, 1))


def ncf_reference(user, item, params):
    """Pure-JAX f32 reference mirroring the PyTorch forward semantics."""
    (gmf_user_emb, gmf_item_emb, mlp_user_emb, mlp_item_emb,
     w1, b1, w2, b2, wf, bf) = params
    gmf = (jnp.take(gmf_user_emb, user, axis=0)
           * jnp.take(gmf_item_emb, item, axis=0))
    cat = jnp.concatenate([jnp.take(mlp_user_emb, user, axis=0),
                           jnp.take(mlp_item_emb, item, axis=0)], axis=-1)
    h = jnp.maximum(cat @ w1 + b1, 0.0)
    mlp = h @ w2 + b2
    fused = jnp.concatenate([gmf, mlp], axis=-1)
    return (fused @ wf + bf)[:, 0]


if __name__ == "__main__":
    num_users, num_items = 50, 40
    embed_size, hidden_size = 64, 64
    batch = 200  # not a multiple of 16 -> exercises padding + slicing

    key = jax.random.PRNGKey(0)
    kp, ku, ki = jax.random.split(key, 3)
    params = init_params(kp, num_users, num_items, embed_size, hidden_size)
    kparams = prepare_params(params)  # bf16 embeddings/w1, folded tail layout

    user = jax.random.randint(ku, (batch,), 0, num_users, dtype=jnp.int32)
    item = jax.random.randint(ki, (batch,), 0, num_items, dtype=jnp.int32)

    out = ncf_forward(user, item, kparams)
    jax.block_until_ready(out)

    ref = ncf_reference(user, item, params)
    assert out.shape == (batch,)
    # bf16 inputs with f32 accumulation vs f32 reference -> loosened tolerance.
    assert jnp.allclose(out, ref, atol=2e-2, rtol=2e-2), (
        float(jnp.max(jnp.abs(out - ref))))

    print("KERNEL_OK")
</pallas_src>

<mosaic_0001>
module attributes {stable_mosaic.version = 11 : i64} {
  func.func @ncf_kernel(%arg0: i32, %arg1: memref<208x64xbf16, #tpu.memory_space<vmem>>, %arg2: memref<208x64xbf16, #tpu.memory_space<vmem>>, %arg3: memref<208x128xbf16, #tpu.memory_space<vmem>>, %arg4: memref<128x64xbf16, #tpu.memory_space<vmem>>, %arg5: memref<1x64xf32, #tpu.memory_space<vmem>>, %arg6: memref<1x64xf32, #tpu.memory_space<vmem>>, %arg7: memref<1xf32, #tpu.memory_space<smem>>, %arg8: memref<208x1xf32, #tpu.memory_space<vmem>>) attributes {dimension_semantics = [#tpu.dimension_semantics<parallel>], iteration_bounds = array<i64: 1>, scalar_prefetch = 0 : i64, scratch_operands = 0 : i64, tpu.core_type = #tpu.core_type<tc>, window_params = [{transform_indices = @transform_0, window_bounds = array<i64: 208, 64>}, {transform_indices = @transform_1, window_bounds = array<i64: 208, 64>}, {transform_indices = @transform_2, window_bounds = array<i64: 208, 128>}, {pipeline_mode = #tpu.pipeline_mode<synchronous>, transform_indices = @transform_3, window_bounds = array<i64: 128, 64>}, {pipeline_mode = #tpu.pipeline_mode<synchronous>, transform_indices = @transform_4, window_bounds = array<i64: 1, 64>}, {pipeline_mode = #tpu.pipeline_mode<synchronous>, transform_indices = @transform_5, window_bounds = array<i64: 1, 64>}, {transform_indices = @transform_6, window_bounds = array<i64: 1>}, {transform_indices = @transform_7, window_bounds = array<i64: 208, 1>}]} {
    %c0 = arith.constant 0 : index
    %c0_0 = arith.constant 0 : index
    %0 = vector.load %arg1[%c0, %c0_0] : memref<208x64xbf16, #tpu.memory_space<vmem>>, vector<208x64xbf16>
    %1 = arith.extf %0 : vector<208x64xbf16> to vector<208x64xf32>
    %c0_1 = arith.constant 0 : index
    %c0_2 = arith.constant 0 : index
    %2 = vector.load %arg2[%c0_1, %c0_2] : memref<208x64xbf16, #tpu.memory_space<vmem>>, vector<208x64xbf16>
    %3 = arith.extf %2 : vector<208x64xbf16> to vector<208x64xf32>
    %4 = arith.mulf %1, %3 : vector<208x64xf32>
    %cst = arith.constant dense<0.000000e+00> : vector<208xf32>
    %5 = vector.multi_reduction <add>, %4, %cst [1] : vector<208x64xf32> to vector<208xf32>
    %6 = vector.shape_cast %5 : vector<208xf32> to vector<208x1xf32>
    %c0_3 = arith.constant 0 : index
    %c0_4 = arith.constant 0 : index
    %7 = vector.load %arg3[%c0_3, %c0_4] : memref<208x128xbf16, #tpu.memory_space<vmem>>, vector<208x128xbf16>
    %c0_5 = arith.constant 0 : index
    %c0_6 = arith.constant 0 : index
    %8 = vector.load %arg4[%c0_5, %c0_6] : memref<128x64xbf16, #tpu.memory_space<vmem>>, vector<128x64xbf16>
    %cst_7 = arith.constant dense<0.000000e+00> : vector<208x64xf32>
    %9 = tpu.matmul %7, %8, %cst_7 {dimension_numbers = #tpu.dot_dimension_numbers<[1], [0], [0], [1], [0, 0, 1, 1], [], []>} : vector<208x128xbf16>, vector<128x64xbf16>, vector<208x64xf32> -> vector<208x64xf32>
    %c0_8 = arith.constant 0 : index
    %c0_9 = arith.constant 0 : index
    %10 = vector.load %arg5[%c0_8, %c0_9] : memref<1x64xf32, #tpu.memory_space<vmem>>, vector<1x64xf32>
    %11 = vector.broadcast %10 : vector<1x64xf32> to vector<208x64xf32>
    %12 = arith.addf %9, %11 : vector<208x64xf32>
    %cst_10 = arith.constant 0.000000e+00 : f32
    %13 = vector.broadcast %cst_10 : f32 to vector<208x64xf32>
    %14 = arith.maximumf %12, %13 : vector<208x64xf32>
    %c0_11 = arith.constant 0 : index
    %c0_12 = arith.constant 0 : index
    %15 = vector.load %arg6[%c0_11, %c0_12] : memref<1x64xf32, #tpu.memory_space<vmem>>, vector<1x64xf32>
    %16 = vector.broadcast %15 : vector<1x64xf32> to vector<208x64xf32>
    %17 = arith.mulf %14, %16 : vector<208x64xf32>
    %cst_13 = arith.constant dense<0.000000e+00> : vector<208xf32>
    %18 = vector.multi_reduction <add>, %17, %cst_13 [1] : vector<208x64xf32> to vector<208xf32>
    %19 = vector.shape_cast %18 : vector<208xf32> to vector<208x1xf32>
    %20 = arith.addf %6, %19 : vector<208x1xf32>
    %c0_14 = arith.constant 0 : index
    %21 = memref.load %arg7[%c0_14] : memref<1xf32, #tpu.memory_space<smem>>
    %22 = vector.broadcast %21 : f32 to vector<208x1xf32>
    %23 = arith.addf %20, %22 : vector<208x1xf32>
    %c0_15 = arith.constant 0 : index
    %c0_16 = arith.constant 0 : index
    %24 = vector.load %arg8[%c0_15, %c0_16] : memref<208x1xf32, #tpu.memory_space<vmem>>, vector<208x1xf32>
    tpu.vector_store %arg8[%c0_15, %c0_16], %23 {strides = array<i32>} : memref<208x1xf32, #tpu.memory_space<vmem>>, vector<208x1xf32>,
    return
  }
  func.func @transform_0(%arg0: i32) -> (i32, i32) {
    %c0_i32 = arith.constant 0 : i32
    %c0_i32_0 = arith.constant 0 : i32
    return %arg0, %c0_i32 : i32, i32
  }
  func.func @transform_1(%arg0: i32) -> (i32, i32) {
    %c0_i32 = arith.constant 0 : i32
    %c0_i32_0 = arith.constant 0 : i32
    return %arg0, %c0_i32 : i32, i32
  }
  func.func @transform_2(%arg0: i32) -> (i32, i32) {
    %c0_i32 = arith.constant 0 : i32
    %c0_i32_0 = arith.constant 0 : i32
    return %arg0, %c0_i32 : i32, i32
  }
  func.func @transform_3(%arg0: i32) -> (i32, i32) {
    %c0_i32 = arith.constant 0 : i32
    %c0_i32_0 = arith.constant 0 : i32
    %c0_i32_1 = arith.constant 0 : i32
    return %c0_i32, %c0_i32_0 : i32, i32
  }
  func.func @transform_4(%arg0: i32) -> (i32, i32) {
    %c0_i32 = arith.constant 0 : i32
    %c0_i32_0 = arith.constant 0 : i32
    %c0_i32_1 = arith.constant 0 : i32
    return %c0_i32, %c0_i32_0 : i32, i32
  }
  func.func @transform_5(%arg0: i32) -> (i32, i32) {
    %c0_i32 = arith.constant 0 : i32
    %c0_i32_0 = arith.constant 0 : i32
    %c0_i32_1 = arith.constant 0 : i32
    return %c0_i32, %c0_i32_0 : i32, i32
  }
  func.func @transform_6(%arg0: i32) -> i32 {
    %c0_i32 = arith.constant 0 : i32
    %c0_i32_0 = arith.constant 0 : i32
    return %c0_i32 : i32
  }
  func.func @transform_7(%arg0: i32) -> (i32, i32) {
    %c0_i32 = arith.constant 0 : i32
    %c0_i32_0 = arith.constant 0 : i32
    return %arg0, %c0_i32 : i32, i32
  }
}

</mosaic_0001>

<bundles_post_ra>
// kernel: tpu_custom_call.1
= control target key start
LH: loop header
LB: loop body
LE: loop exit
PB: predicated region body
PF: predicated region fallthrough
CT: control target
= control target key end

     0   :  { %vm157_vm0 = vcmask 523264   ;;  %vm670_vm1 = vcmask 7168   ;;  %s1450_s3 = inlined_call_operand.vmem [shape: bf16[128,64], index: 3, kind: input, shape index: {}]   ;;  %s1451_s4 = inlined_call_operand.vmem [shape: f32[1,64], index: 4, kind: input, shape index: {}]   ;;  %s1452_s2 = inlined_call_operand.vmem [shape: bf16[208,128], index: 2, kind: input, shape index: {}]   ;;  %s1453_s5 = inlined_call_operand.vmem [shape: f32[1,64], index: 5, kind: input, shape index: {}]   ;;  %s1454_s0 = inlined_call_operand.vmem [shape: bf16[208,64], index: 0, kind: input, shape index: {}]   ;;  %s1455_s1 = inlined_call_operand.vmem [shape: bf16[208,64], index: 1, kind: input, shape index: {}]   ;;  %s1456_s6 = inlined_call_operand.<no memory space> [shape: f32[1], index: 6, kind: input, shape index: {}]   ;;  %s1457_s7 = inlined_call_operand.vmem [shape: f32[208,1], index: 7, kind: output, shape index: {}]  }
   0x1   :  { %v805_v0 = vld [vmem:[%s1450_s3 + $0x38] sm:$0xff]  ;;  %v804_v1 = vld [vmem:[%s1450_s3 + $0x30] sm:$0xff]  ;;  %v803_v2 = vld [vmem:[%s1450_s3 + $0x28] sm:$0xff] }
   0x2   :  { %408 = vmatpush.bf16.msra.mxu0 %v805_v0  ;;  %934 = vmatpush.bf16.msra.mxu1 %v805_v0  ;;  %v802_v3 = vld [vmem:[%s1450_s3 + $0x20] sm:$0xff]  ;;  %v801_v4 = vld [vmem:[%s1450_s3 + $0x18] sm:$0xff]  ;;  %v800_v5 = vld [vmem:[%s1450_s3 + $0x10] sm:$0xff] }
   0x3   :  { %935 = vmatpush.bf16.msra.mxu2 %v805_v0  ;;  %936 = vmatpush.bf16.msra.mxu3 %v805_v0  ;;  %v799_v6 = vld [vmem:[%s1450_s3 + $0x8] sm:$0xff]  ;;  %v798_v7 = vld [vmem:[%s1450_s3] sm:$0xff]  ;;  %v788_v9 = vld [vmem:[%s1452_s2 + $0x18] sm:$0xff] }
   0x4   :  { %v785_v8 = vld [vmem:[%s1452_s2] sm:$0xff]  ;;  %v791_v10 = vld [vmem:[%s1452_s2 + $0x30] sm:$0xff]  ;;  %v786_v12 = vld [vmem:[%s1452_s2 + $0x8] sm:$0xff] }
   0x5   :  { %v795_v11 = vld [vmem:[%s1452_s2 + $0x50] sm:$0xff]  ;;  %v789_v13 = vld [vmem:[%s1452_s2 + $0x20] sm:$0xff]  ;;  %v792_v14 = vld [vmem:[%s1452_s2 + $0x38] sm:$0xff] }
   0x6   :  { %409 = vmatpush.bf16.msra.mxu0 %v804_v1  ;;  %937 = vmatpush.bf16.msra.mxu1 %v804_v1  ;;  %v796_v15 = vld [vmem:[%s1452_s2 + $0x58] sm:$0xff]  ;;  %v910_v16 = vld [vmem:[%s1454_s0 + $0x8] sm:$0xff]   ;;  %v911_v20 = vld [vmem:[%s1454_s0 + $0x10] sm:$0xff]  }
   0x7   :  { %938 = vmatpush.bf16.msra.mxu2 %v804_v1  ;;  %939 = vmatpush.bf16.msra.mxu3 %v804_v1  ;;  %v922_v17 = vld [vmem:[%s1455_s1 + $0x8] sm:$0xff]   ;;  %v812_v18 = vunpack.c.l.bf16 %v910_v16  ;;  %v923_v21 = vld [vmem:[%s1455_s1 + $0x10] sm:$0xff]   ;;  %v807_v22 = vld [vmem:[%s1454_s0] sm:$0xff]   ;;  %v816_v23 = vunpack.c.l.bf16 %v911_v20  ;;  %v813_v29 = vunpack.c.h.bf16 %v910_v16  ;;  %v817_v34 = vunpack.c.h.bf16 %v911_v20 }
   0x8   :  { %v864_v19 = vunpack.c.l.bf16 %v922_v17  ;;  %v868_v24 = vunpack.c.l.bf16 %v923_v21  ;;  %v808_v25 = vunpack.c.l.bf16 %v807_v22  ;;  %v859_v26 = vld [vmem:[%s1455_s1] sm:$0xff]   ;;  %v865_v30 = vunpack.c.h.bf16 %v922_v17  ;;  %v912_v41 = vld [vmem:[%s1454_s0 + $0x18] sm:$0xff]   ;;  %v787_v46 = vld [vmem:[%s1452_s2 + $0x10] sm:$0xff] }
   0x9   :  { %v860_v28 = vunpack.c.l.bf16 %v859_v26  ;;  %v869_v35 = vunpack.c.h.bf16 %v923_v21  ;;  %v809_v37 = vunpack.c.h.bf16 %v807_v22  ;;  %v861_v38 = vunpack.c.h.bf16 %v859_v26  ;;  %v924_v42 = vld [vmem:[%s1455_s1 + $0x18] sm:$0xff]   ;;  %v913_v45 = vld [vmem:[%s1454_s0 + $0x20] sm:$0xff]   ;;  %v790_v47 = vld [vmem:[%s1452_s2 + $0x28] sm:$0xff] }
   0xa   :  { %410 = vmatpush.bf16.msra.mxu0 %v803_v2  ;;  %940 = vmatpush.bf16.msra.mxu1 %v803_v2  ;;  %v133_v27 = vmul.f32 %v864_v19, %v812_v18  ;;  %v135_v31 = vmul.f32 %v868_v24, %v816_v23  ;;  %v134_v40 = vmul.f32 %v865_v30, %v813_v29  ;;  %v821_v49 = vunpack.c.h.bf16 %v912_v41  ;;  %v925_v51 = vld [vmem:[%s1455_s1 + $0x20] sm:$0xff]   ;;  %v914_v61 = vld [vmem:[%s1454_s0 + $0x28] sm:$0xff]   ;;  %v928_v19 = vld [vmem:[%s1455_s1 + $0x38] sm:$0xff]  }
   0xb   :  { %941 = vmatpush.bf16.msra.mxu2 %v803_v2  ;;  %942 = vmatpush.bf16.msra.mxu3 %v803_v2  ;;  %v131_v33 = vmul.f32 %v860_v28, %v808_v25  ;;  %v136_v43 = vmul.f32 %v869_v35, %v817_v34  ;;  %v132_v44 = vmul.f32 %v861_v38, %v809_v37  ;;  %v873_v50 = vunpack.c.h.bf16 %v924_v42  ;;  %v793_v52 = vld [vmem:[%s1452_s2 + $0x40] sm:$0xff]  ;;  %v926_v62 = vld [vmem:[%s1455_s1 + $0x28] sm:$0xff]  }
   0xc   :  { %v164_v32 = vsel %vm157_vm0, %v133_v27, 0.0  ;;  %v170_v36 = vsel %vm157_vm0, %v135_v31, 0.0  ;;  %v167_v48 = vsel %vm157_vm0, %v134_v40, 0.0  ;;  %v797_v53 = vld [vmem:[%s1452_s2 + $0x60] sm:$0xff]  ;;  %v824_v55 = vunpack.c.l.bf16 %v913_v45  ;;  %v794_v20 = vld [vmem:[%s1452_s2 + $0x48] sm:$0xff] }
   0xd   :  { %165 = vadd.xlane.f32.xlu1 %v164_v32  ;;  %171 = vadd.xlane.f32.xlu2 %v170_v36  ;;  %v158_v39 = vsel %vm157_vm0, %v131_v33, 0.0  ;;  %v173_v54 = vsel %vm157_vm0, %v136_v43, 0.0  ;;  %v161_v56 = vsel %vm157_vm0, %v132_v44, 0.0  ;;  %v876_v57 = vunpack.c.l.bf16 %v925_v51  ;;  %v917_v28 = vld [vmem:[%s1454_s0 + $0x40] sm:$0xff]   ;;  %v930_v43 = vld [vmem:[%s1455_s1 + $0x48] sm:$0xff]  }
   0xe   :  { %411 = vmatpush.bf16.msra.mxu0 %v802_v3  ;;  %943 = vmatpush.bf16.msra.mxu1 %v802_v3  ;;  %v820_v58 = vunpack.c.l.bf16 %v912_v41  ;;  %v872_v59 = vunpack.c.l.bf16 %v924_v42  ;;  %v138_v60 = vmul.f32 %v873_v50, %v821_v49  ;;  %v828_v2 = vunpack.c.l.bf16 %v914_v61  ;;  %v929_v29 = vld [vmem:[%s1455_s1 + $0x40] sm:$0xff]   ;;  %v918_v42 = vld [vmem:[%s1454_s0 + $0x48] sm:$0xff]   ;;  %v919_v49 = vld [vmem:[%s1454_s0 + $0x50] sm:$0xff]  }
   0xf   :  { %944 = vmatpush.bf16.msra.mxu2 %v802_v3  ;;  %945 = vmatpush.bf16.msra.mxu3 %v802_v3  ;;  %v139_v63 = vmul.f32 %v876_v57, %v824_v55  ;;  %v880_v3 = vunpack.c.l.bf16 %v926_v62  ;;  %v888_v24 = vunpack.c.l.bf16 %v928_v19  ;;  %v840_v33 = vunpack.c.l.bf16 %v917_v28  ;;  %v931_v50 = vld [vmem:[%s1455_s1 + $0x50] sm:$0xff]  }
  0x10   :  { %159 = vadd.xlane.f32.xlu0 %v158_v39  ;;  %v137_v0 = vmul.f32 %v872_v59, %v820_v58  ;;  %v179_v1 = vsel %vm157_vm0, %v138_v60, 0.0  ;;  %v892_v34 = vunpack.c.l.bf16 %v929_v29  ;;  %v841_v35 = vunpack.c.h.bf16 %v917_v28  ;;  %v920_v58 = vld [vmem:[%s1454_s0 + $0x58] sm:$0xff]   ;;  %v1177_v28 = vld [vmem:[%s1453_s5] ss:$0 sm:$0xff] }
  0x11   :  { %v893_v36 = vunpack.c.h.bf16 %v929_v29  ;;  %v889_v38 = vunpack.c.h.bf16 %v928_v19  ;;  %v844_v55 = vunpack.c.l.bf16 %v918_v42  ;;  %v932_v59 = vld [vmem:[%s1455_s1 + $0x58] sm:$0xff]  }
  0x12   :  { %412 = vmatpush.bf16.msra.mxu0 %v801_v4  ;;  %946 = vmatpush.bf16.msra.mxu1 %v801_v4  ;;  %v147_v41 = vmul.f32 %v892_v34, %v840_v33 }
  0x13   :  { %947 = vmatpush.bf16.msra.mxu2 %v801_v4  ;;  %948 = vmatpush.bf16.msra.mxu3 %v801_v4  ;;  %v829_v4 = vunpack.c.h.bf16 %v914_v61  ;;  %v148_v44 = vmul.f32 %v893_v36, %v841_v35 }
  0x15   :  { %168 = vadd.xlane.f32.xlu1 %v167_v48  ;;  %174 = vadd.xlane.f32.xlu2 %v173_v54  ;;  %v897_v48 = vunpack.c.h.bf16 %v930_v43  ;;  %v900_v54 = vunpack.c.l.bf16 %v931_v50 }
  0x16   :  { %413 = vmatpush.bf16.msra.mxu0 %v800_v5  ;;  %949 = vmatpush.bf16.msra.mxu1 %v800_v5 }
  0x17   :  { %950 = vmatpush.bf16.msra.mxu2 %v800_v5  ;;  %951 = vmatpush.bf16.msra.mxu3 %v800_v5  ;;  %v881_v5 = vunpack.c.h.bf16 %v926_v62 }
  0x18   :  { %162 = vadd.xlane.f32.xlu0 %v161_v56  ;;  %v896_v56 = vunpack.c.l.bf16 %v930_v43 }
  0x1a   :  { %414 = vmatpush.bf16.msra.mxu0 %v799_v6  ;;  %952 = vmatpush.bf16.msra.mxu1 %v799_v6  ;;  %v149_v61 = vmul.f32 %v896_v56, %v844_v55 }
  0x1b   :  { %953 = vmatpush.bf16.msra.mxu2 %v799_v6  ;;  %954 = vmatpush.bf16.msra.mxu3 %v799_v6  ;;  %v182_v6 = vsel %vm157_vm0, %v139_v63, 0.0  ;;  %v852_v63 = vunpack.c.l.bf16 %v920_v58 }
  0x1d   :  { %180 = vadd.xlane.f32.xlu1 %v179_v1  ;;  %183 = vadd.xlane.f32.xlu2 %v182_v6  ;;  %v905_v6 = vunpack.c.h.bf16 %v932_v59 }
  0x1e   :  { %415 = vmatpush.bf16.msra.mxu0 %v798_v7  ;;  %955 = vmatpush.bf16.msra.mxu1 %v798_v7 }
  0x1f   :  { %956 = vmatpush.bf16.msra.mxu2 %v798_v7  ;;  %957 = vmatpush.bf16.msra.mxu3 %v798_v7  ;;  %v176_v7 = vsel %vm157_vm0, %v137_v0, 0.0  ;;  %v904_v0 = vunpack.c.l.bf16 %v932_v59 }
  0x20   :  { %177 = vadd.xlane.f32.xlu0 %v176_v7  ;;  %v849_v7 = vunpack.c.h.bf16 %v919_v49 }
  0x21   :  { %416 = vmatmul.bf16.vlgmr.msra.gmra.mxu0 %v785_v8  ;;  %431 = vmatmul.bf16.vlgmr.msra.gmra.mxu1 %v788_v9  ;;  %v825_v8 = vunpack.c.h.bf16 %v913_v45  ;;  %v877_v9 = vunpack.c.h.bf16 %v925_v51  ;;  %v209_v51 = vsel %vm157_vm0, %v148_v44, 0.0 }
  0x22   :  { %446 = vmatmul.bf16.vlgmr.msra.gmra.mxu2 %v791_v10  ;;  %466 = vmatmul.bf16.vlgmr.msra.gmra.mxu3 %v795_v11  ;;  %v141_v10 = vmul.f32 %v880_v3, %v828_v2  ;;  %v915_v11 = vld [vmem:[%s1454_s0 + $0x30] sm:$0xff]   ;;  %v212_v2 = vsel %vm157_vm0, %v149_v61, 0.0  ;;  %v153_v3 = vmul.f32 %v904_v0, %v852_v63 }
  0x23   :  { %v833_v17 = vunpack.c.h.bf16 %v915_v11  ;;  %v832_v25 = vunpack.c.l.bf16 %v915_v11 }
  0x24   :  { %v188_v16 = vsel %vm157_vm0, %v141_v10, 0.0 }
  0x25   :  { %189 = vadd.xlane.f32.xlu1 %v188_v16 }
  0x31   :  { %421 = vmatmul.bf16.gmra.mxu0 %v786_v12  ;;  %436 = vmatmul.bf16.gmra.mxu1 %v789_v13  ;;  %v927_v12 = vld [vmem:[%s1455_s1 + $0x30] sm:$0xff]   ;;  %v142_v13 = vmul.f32 %v881_v5, %v829_v4  ;;  %v224_v4 = vsel %vm157_vm0, %v153_v3, 0.0  ;;  %v853_v5 = vunpack.c.h.bf16 %v920_v58 }
  0x32   :  { %451 = vmatmul.bf16.gmra.mxu2 %v792_v14  ;;  %471 = vmatmul.bf16.gmra.mxu3 %v796_v15  ;;  %v140_v14 = vmul.f32 %v877_v9, %v825_v8  ;;  %v916_v15 = vld [vmem:[%s1454_s0 + $0x38] sm:$0xff]   ;;  %v885_v18 = vunpack.c.h.bf16 %v927_v12  ;;  %v884_v26 = vunpack.c.l.bf16 %v927_v12  ;;  %v901_v8 = vunpack.c.h.bf16 %v931_v50 }
  0x33   :  { %v191_v21 = vsel %vm157_vm0, %v142_v13, 0.0  ;;  %v836_v22 = vunpack.c.l.bf16 %v916_v15  ;;  %v837_v37 = vunpack.c.h.bf16 %v916_v15  ;;  %v154_v9 = vmul.f32 %v905_v6, %v853_v5  ;;  %v921_v13 = vld [vmem:[%s1454_s0 + $0x60] sm:$0xff]  }
  0x34   :  { %v185_v23 = vsel %vm157_vm0, %v140_v14, 0.0  ;;  %v144_v27 = vmul.f32 %v885_v18, %v833_v17  ;;  %192 = vadd.xlane.f32.xlu2 %v191_v21  ;;  %v143_v31 = vmul.f32 %v884_v26, %v832_v25  ;;  %v152_v10 = vmul.f32 %v901_v8, %v849_v7  ;;  %v933_v14 = vld [vmem:[%s1455_s1 + $0x60] sm:$0xff]  }
  0x35   :  { %186 = vadd.xlane.f32.xlu0 %v185_v23  ;;  %v145_v30 = vmul.f32 %v888_v24, %v836_v22  ;;  %v146_v45 = vmul.f32 %v889_v38, %v837_v37  ;;  %v227_v11 = vsel %vm157_vm0, %v154_v9, 0.0  ;;  %v857_v15 = vunpack.c.h.bf16 %v921_v13  ;;  %v1170_v23 = vld [vmem:[%s1451_s4] ss:$0 sm:$0xff] }
  0x36   :  { %v197_v32 = vsel %vm157_vm0, %v144_v27, 0.0  ;;  %v194_v40 = vsel %vm157_vm0, %v143_v31, 0.0  ;;  %v221_v12 = vsel %vm157_vm0, %v152_v10, 0.0  ;;  %v909_v16 = vunpack.c.h.bf16 %v933_v14 }
  0x37   :  { %198 = vadd.xlane.f32.xlu1 %v197_v32  ;;  %v200_v39 = vsel %vm157_vm0, %v145_v30, 0.0  ;;  %v856_v18 = vunpack.c.l.bf16 %v921_v13  ;;  %v908_v19 = vunpack.c.l.bf16 %v933_v14 }
  0x38   :  { %v156_v17 = vmul.f32 %v909_v16, %v857_v15 }
  0x39   :  { %v155_v21 = vmul.f32 %v908_v19, %v856_v18 }
  0x3b   :  { %v230_v22 = vsel %vm157_vm0, %v155_v21, 0.0 }
  0x3c   :  { %201 = vadd.xlane.f32.xlu2 %v200_v39 }
  0x3d   :  { %195 = vadd.xlane.f32.xlu0 %v194_v40 }
  0x41   :  { %426 = vmatmul.bf16.gmra.mxu0 %v787_v46  ;;  %441 = vmatmul.bf16.gmra.mxu1 %v790_v47  ;;  %v206_v46 = vsel %vm157_vm0, %v147_v41, 0.0  ;;  %v845_v47 = vunpack.c.h.bf16 %v918_v42 }
  0x42   :  { %456 = vmatmul.bf16.gmra.mxu2 %v793_v52  ;;  %476 = vmatmul.bf16.gmra.mxu3 %v797_v53  ;;  %v203_v52 = vsel %vm157_vm0, %v146_v45, 0.0  ;;  %v848_v53 = vunpack.c.l.bf16 %v919_v49 }
  0x43   :  { %207 = vadd.xlane.f32.xlu1 %v206_v46  ;;  %v150_v57 = vmul.f32 %v897_v48, %v845_v47 }
  0x44   :  { %210 = vadd.xlane.f32.xlu2 %v209_v51  ;;  %v151_v60 = vmul.f32 %v900_v54, %v848_v53 }
  0x45   :  { %204 = vadd.xlane.f32.xlu0 %v203_v52  ;;  %v215_v62 = vsel %vm157_vm0, %v150_v57, 0.0 }
  0x46   :  { %v218_v1 = vsel %vm157_vm0, %v151_v60, 0.0 }
  0x4b   :  { %216 = vadd.xlane.f32.xlu1 %v215_v62 }
  0x4c   :  { %219 = vadd.xlane.f32.xlu2 %v218_v1 }
  0x4d   :  { %213 = vadd.xlane.f32.xlu0 %v212_v2 }
  0x52   :  { %461 = vmatmul.bf16.gmra.mxu2 %v794_v20  ;;  %v233_v20 = vsel %vm157_vm0, %v156_v17, 0.0 }
  0x53   :  { %225 = vadd.xlane.f32.xlu1 %v224_v4 }
  0x54   :  { %228 = vadd.xlane.f32.xlu2 %v227_v11 }
  0x55   :  { %222 = vadd.xlane.f32.xlu0 %v221_v12 }
  0x5b   :  { %234 = vadd.xlane.f32.xlu1 %v233_v20 }
  0x5d   :  { %231 = vadd.xlane.f32.xlu0 %v230_v22 }
  0x9e   :  { %v417_v24 = vpop.f32.mrf.mxu0  ;;  %v432_v25 = vpop.f32.mrf.mxu1 }
  0x9f   :  { %v418_v26 = vadd.f32 %v1170_v23, %v417_v24  ;;  %v433_v27 = vadd.f32 %v1170_v23, %v432_v25 }
  0xa1   :  { %v482_v29 = vmax.f32 %v418_v26, 0.0  ;;  %v488_v30 = vmax.f32 %v433_v27, 0.0 }
  0xa3   :  { %v512_v31 = vmul.f32 %v1177_v28, %v482_v29  ;;  %v518_v39 = vmul.f32 %v1177_v28, %v488_v30 }
  0xa5   :  { %v447_v32 = vpop.f32.mrf.mxu2  ;;  %v467_v33 = vpop.f32.mrf.mxu3  ;;  %v538_v34 = vsel %vm157_vm0, %v512_v31, 0.0  ;;  %v556_v45 = vsel %vm157_vm0, %v518_v39, 0.0 }
  0xa6   :  { %v468_v35 = vadd.f32 %v1170_v23, %v467_v33  ;;  %v419_v36 = vpop.f32.mrf.mxu0  ;;  %v434_v37 = vpop.f32.mrf.mxu1  ;;  %539 = vadd.xlane.f32.xlu2 %v538_v34  ;;  %v448_v41 = vadd.f32 %v1170_v23, %v447_v32 }
  0xa7   :  { %v420_v38 = vadd.f32 %v1170_v23, %v419_v36  ;;  %v435_v43 = vadd.f32 %v1170_v23, %v434_v37  ;;  %v1220_v37 = vpop.xlane.xlu1 %165 }
  0xa8   :  { %v502_v40 = vmax.f32 %v468_v35, 0.0  ;;  %v494_v48 = vmax.f32 %v448_v41, 0.0 }
  0xa9   :  { %v483_v42 = vmax.f32 %v420_v38, 0.0  ;;  %v489_v52 = vmax.f32 %v435_v43, 0.0 }
  0xaa   :  { %v532_v44 = vmul.f32 %v1177_v28, %v502_v40  ;;  %v524_v59 = vmul.f32 %v1177_v28, %v494_v48  ;;  %v1227_v48 = vpop.xlane.xlu0 %159 }
  0xab   :  { %v513_v46 = vmul.f32 %v1177_v28, %v483_v42  ;;  %v519_v61 = vmul.f32 %v1177_v28, %v489_v52 }
  0xac   :  { %v598_v47 = vsel %vm157_vm0, %v532_v44, 0.0  ;;  %v574_v3 = vsel %vm157_vm0, %v524_v59, 0.0 }
  0xad   :  { %v449_v49 = vpop.f32.mrf.mxu2  ;;  %599 = vadd.xlane.f32.xlu1 %v598_v47  ;;  %v469_v50 = vpop.f32.mrf.mxu3  ;;  %v541_v51 = vsel %vm157_vm0, %v513_v46, 0.0  ;;  %v559_v7 = vsel %vm157_vm0, %v519_v61, 0.0 }
  0xae   :  { %v422_v53 = vpop.f32.mrf.mxu0  ;;  %557 = vadd.xlane.f32.xlu2 %v556_v45  ;;  %542 = vadd.xlane.f32.xlu0 %v541_v51  ;;  %v437_v54 = vpop.f32.mrf.mxu1  ;;  %v470_v58 = vadd.f32 %v1170_v23, %v469_v50  ;;  %v450_v60 = vadd.f32 %v1170_v23, %v449_v49 }
  0xaf   :  { %v423_v55 = vadd.f32 %v1170_v23, %v422_v53  ;;  %v438_v56 = vadd.f32 %v1170_v23, %v437_v54 }
  0xb0   :  { %v503_v0 = vmax.f32 %v470_v58, 0.0  ;;  %v495_v5 = vmax.f32 %v450_v60, 0.0 }
  0xb1   :  { %v484_v57 = vmax.f32 %v423_v55, 0.0  ;;  %v490_v62 = vmax.f32 %v438_v56, 0.0  ;;  %v1233_v55 = vpop.xlane.xlu2 %171 }
  0xb2   :  { %v533_v13 = vmul.f32 %v1177_v28, %v503_v0  ;;  %v525_v14 = vmul.f32 %v1177_v28, %v495_v5 }
  0xb3   :  { %v514_v63 = vmul.f32 %v1177_v28, %v484_v57  ;;  %v520_v9 = vmul.f32 %v1177_v28, %v490_v62 }
  0xb4   :  { %v601_v21 = vsel %vm157_vm0, %v533_v13, 0.0  ;;  %v577_v25 = vsel %vm157_vm0, %v525_v14, 0.0 }
  0xb5   :  { %v452_v1 = vpop.f32.mrf.mxu2  ;;  %v472_v2 = vpop.f32.mrf.mxu3  ;;  %v544_v4 = vsel %vm157_vm0, %v514_v63, 0.0  ;;  %v562_v15 = vsel %vm157_vm0, %v520_v9, 0.0 }
  0xb6   :  { %v424_v6 = vpop.f32.mrf.mxu0  ;;  %575 = vadd.xlane.f32.xlu2 %v574_v3  ;;  %545 = vadd.xlane.f32.xlu1 %v544_v4  ;;  %v439_v8 = vpop.f32.mrf.mxu1  ;;  %v473_v10 = vadd.f32 %v1170_v23, %v472_v2  ;;  %v453_v11 = vadd.f32 %v1170_v23, %v452_v1 }
  0xb7   :  { %560 = vadd.xlane.f32.xlu0 %v559_v7  ;;  %v425_v12 = vadd.f32 %v1170_v23, %v424_v6  ;;  %v440_v31 = vadd.f32 %v1170_v23, %v439_v8  ;;  %v1243_v6 = vpop.xlane.xlu1 %168  ;;  %v1247_v9 = vpop.xlane.xlu0 %162 }
  0xb8   :  { %v504_v16 = vmax.f32 %v473_v10, 0.0  ;;  %v496_v17 = vmax.f32 %v453_v11, 0.0 }
  0xb9   :  { %v485_v18 = vmax.f32 %v425_v12, 0.0  ;;  %v491_v38 = vmax.f32 %v440_v31, 0.0  ;;  %v1252_v13 = vpop.xlane.xlu2 %174 }
  0xba   :  { %v534_v30 = vmul.f32 %v1177_v28, %v504_v16  ;;  %v526_v33 = vmul.f32 %v1177_v28, %v496_v17 }
  0xbb   :  { %v515_v32 = vmul.f32 %v1177_v28, %v485_v18  ;;  %v521_v54 = vmul.f32 %v1177_v28, %v491_v38 }
  0xbc   :  { %v604_v36 = vsel %vm157_vm0, %v534_v30, 0.0  ;;  %v580_v41 = vsel %vm157_vm0, %v526_v33, 0.0 }
  0xbd   :  { %v454_v19 = vpop.f32.mrf.mxu2  ;;  %v474_v20 = vpop.f32.mrf.mxu3  ;;  %v547_v40 = vsel %vm157_vm0, %v515_v32, 0.0  ;;  %v565_v63 = vsel %vm157_vm0, %v521_v54, 0.0 }
  0xbe   :  { %v427_v22 = vpop.f32.mrf.mxu0  ;;  %v475_v24 = vadd.f32 %v1170_v23, %v474_v20  ;;  %602 = vadd.xlane.f32.xlu2 %v601_v21  ;;  %563 = vadd.xlane.f32.xlu1 %v562_v15  ;;  %v442_v26 = vpop.f32.mrf.mxu1  ;;  %v455_v52 = vadd.f32 %v1170_v23, %v454_v19 }
  0xbf   :  { %578 = vadd.xlane.f32.xlu0 %v577_v25  ;;  %v428_v27 = vadd.f32 %v1170_v23, %v427_v22  ;;  %v443_v49 = vadd.f32 %v1170_v23, %v442_v26  ;;  %v1260_v25 = vpop.xlane.xlu1 %180  ;;  %v178_v26 = vpop.xlane.xlu0 %177 }
  0xc0   :  { %v505_v29 = vmax.f32 %v475_v24, 0.0  ;;  %v497_v61 = vmax.f32 %v455_v52, 0.0 }
  0xc1   :  { %v486_v35 = vmax.f32 %v428_v27, 0.0  ;;  %v492_v59 = vmax.f32 %v443_v49, 0.0  ;;  %v1264_v31 = vpop.xlane.xlu2 %183 }
  0xc2   :  { %v1217_v34 = vmul.f32 %v1177_v28, %v505_v29  ;;  %v527_v8 = vmul.f32 %v1177_v28, %v497_v61 }
  0xc3   :  { %v516_v50 = vmul.f32 %v1177_v28, %v486_v35  ;;  %v522_v4 = vmul.f32 %v1177_v28, %v492_v59 }
  0xc4   :  { %v583_v17 = vsel %vm157_vm0, %v527_v8, 0.0 }
  0xc5   :  { %v457_v39 = vpop.f32.mrf.mxu2  ;;  %v477_v42 = vpop.f32.mrf.mxu3  ;;  %v550_v60 = vsel %vm157_vm0, %v516_v50, 0.0  ;;  %v568_v14 = vsel %vm157_vm0, %v522_v4, 0.0 }
  0xc6   :  { %v429_v43 = vpop.f32.mrf.mxu0  ;;  %548 = vadd.xlane.f32.xlu2 %v547_v40  ;;  %581 = vadd.xlane.f32.xlu1 %v580_v41  ;;  %v444_v44 = vpop.f32.mrf.mxu1  ;;  %v478_v45 = vadd.f32 %v1170_v23, %v477_v42  ;;  %v458_v10 = vadd.f32 %v1170_v23, %v457_v39  ;;  %v607_v40 = vsel %vm157_vm0, %v1217_v34, 0.0 }
  0xc7   :  { %v430_v46 = vadd.f32 %v1170_v23, %v429_v43  ;;  %605 = vadd.xlane.f32.xlu0 %v604_v36  ;;  %v445_v47 = vadd.f32 %v1170_v23, %v444_v44  ;;  %v1270_v39 = vpop.xlane.xlu1 %189  ;;  %v1274_v41 = vpop.xlane.xlu0 %186 }
  0xc8   :  { %v506_v51 = vmax.f32 %v478_v45, 0.0  ;;  %v498_v18 = vmax.f32 %v458_v10, 0.0 }
  0xc9   :  { %v487_v53 = vmax.f32 %v430_v46, 0.0  ;;  %v493_v57 = vmax.f32 %v445_v47, 0.0  ;;  %v1277_v42 = vpop.xlane.xlu2 %192 }
  0xca   :  { %v536_v56 = vmul.f32 %v1177_v28, %v506_v51  ;;  %v528_v24 = vmul.f32 %v1177_v28, %v498_v18 }
  0xcb   :  { %v517_v58 = vmul.f32 %v1177_v28, %v487_v53  ;;  %v523_v3 = vmul.f32 %v1177_v28, %v493_v57 }
  0xcc   :  { %v586_v33 = vsel %vm157_vm0, %v528_v24, 0.0  ;;  %v610_v38 = vsel %vm157_vm0, %v536_v56, 0.0 }
  0xcd   :  { %v459_v62 = vpop.f32.mrf.mxu2  ;;  %v553_v0 = vsel %vm157_vm0, %v517_v58, 0.0  ;;  %v479_v1 = vpop.f32.mrf.mxu3  ;;  %v571_v12 = vsel %vm157_vm0, %v523_v3, 0.0  ;;  %v1299_v58 = vstv %s1456_s6 }
  0xce   :  { %566 = vadd.xlane.f32.xlu2 %v565_v63  ;;  %554 = vadd.xlane.f32.xlu1 %v553_v0  ;;  %v480_v2 = vadd.f32 %v1170_v23, %v479_v1  ;;  %v460_v7 = vadd.f32 %v1170_v23, %v459_v62 }
  0xcf   :  { %551 = vadd.xlane.f32.xlu0 %v550_v60  ;;  %v199_v44 = vpop.xlane.xlu1 %198 }
  0xd0   :  { %v507_v5 = vmax.f32 %v480_v2, 0.0  ;;  %v499_v15 = vmax.f32 %v460_v7, 0.0 }
  0xd1   :  { %v202_v45 = vpop.xlane.xlu2 %201 }
  0xd2   :  { %v537_v11 = vmul.f32 %v1177_v28, %v507_v5  ;;  %v529_v21 = vmul.f32 %v1177_v28, %v499_v15 }
  0xd4   :  { %v589_v30 = vsel %vm157_vm0, %v529_v21, 0.0  ;;  %v613_v43 = vsel %vm157_vm0, %v537_v11, 0.0 }
  0xd5   :  { %v462_v16 = vpop.f32.mrf.mxu2 }
  0xd6   :  { %v463_v19 = vadd.f32 %v1170_v23, %v462_v16  ;;  %584 = vadd.xlane.f32.xlu2 %v583_v17  ;;  %572 = vadd.xlane.f32.xlu1 %v571_v12 }
  0xd7   :  { %569 = vadd.xlane.f32.xlu0 %v568_v14  ;;  %v1280_v46 = vpop.xlane.xlu1 %207 }
  0xd8   :  { %v500_v20 = vmax.f32 %v463_v19, 0.0 }
  0xd9   :  { %v1284_v34 = vpop.xlane.xlu2 %210 }
  0xda   :  { %v530_v22 = vmul.f32 %v1177_v28, %v500_v20 }
  0xdc   :  { %v592_v27 = vsel %vm157_vm0, %v530_v22, 0.0 }
  0xdd   :  { %v464_v29 = vpop.f32.mrf.mxu2 }
  0xde   :  { %v465_v32 = vadd.f32 %v1170_v23, %v464_v29  ;;  %593 = vadd.xlane.f32.xlu2 %v592_v27  ;;  %590 = vadd.xlane.f32.xlu1 %v589_v30 }
  0xdf   :  { %587 = vadd.xlane.f32.xlu0 %v586_v33  ;;  %v1286_v49 = vpop.xlane.xlu1 %216 }
  0xe0   :  { %v501_v35 = vmax.f32 %v465_v32, 0.0 }
  0xe1   :  { %v220_v51 = vpop.xlane.xlu2 %219 }
  0xe2   :  { %v531_v36 = vmul.f32 %v1177_v28, %v501_v35  ;;  %v196_v28 = vpop.xlane.xlu0 %195 }
  0xe4   :  { %v595_v23 = vsel %vm157_vm0, %v531_v36, 0.0 }
  0xe6   :  { %611 = vadd.xlane.f32.xlu2 %v610_v38  ;;  %608 = vadd.xlane.f32.xlu1 %v607_v40 }
  0xe7   :  { %596 = vadd.xlane.f32.xlu0 %v595_v23  ;;  %v226_v52 = vpop.xlane.xlu1 %225 }
  0xe9   :  { %v1290_v54 = vpop.xlane.xlu2 %228 }
  0xea   :  { %v1282_v47 = vpop.xlane.xlu0 %204 }
  0xef   :  { %614 = vadd.xlane.f32.xlu0 %v613_v43  ;;  %v1292_v56 = vpop.xlane.xlu1 %234 }
  0xf2   :  { %v1288_v50 = vpop.xlane.xlu0 %213 }
  0xfa   :  { %v223_v53 = vpop.xlane.xlu0 %222 }
 0x102   :  { %v1294_v57 = vpop.xlane.xlu0 %231 }
 0x119   :  { %v540_v59 = vpop.xlane.xlu2 %539 }
 0x11a   :  { %v616_v60 = vadd.f32 %v540_v59, %v1227_v48 }
 0x11c   :  { %v644_v61 = vadd.f32 %v1299_v58, %v616_v60 }
 0x11e   :  { %671 = vst.msk [vmem:[%s1457_s7] sm:$0xff] %vm670_vm1, %v644_v61 }
 0x120   :  { %v600_v62 = vpop.xlane.xlu1 %599 }
 0x121   :  { %v636_v63 = vadd.f32 %v600_v62, %v220_v51  ;;  %v558_v0 = vpop.xlane.xlu2 %557  ;;  %v543_v1 = vpop.xlane.xlu0 %542 }
 0x122   :  { %v622_v2 = vadd.f32 %v558_v0, %v178_v26  ;;  %v617_v3 = vadd.f32 %v543_v1, %v1247_v9 }
 0x123   :  { %v664_v4 = vadd.f32 %v1299_v58, %v636_v63 }
 0x124   :  { %v650_v5 = vadd.f32 %v1299_v58, %v622_v2  ;;  %v645_v48 = vadd.f32 %v1299_v58, %v617_v3 }
 0x125   :  { %691 = vst.msk [vmem:[%s1457_s7 + $0xa0] sm:$0xff] %vm670_vm1, %v664_v4 }
 0x126   :  { %677 = vst.msk [vmem:[%s1457_s7 + $0x30] sm:$0xff] %vm670_vm1, %v650_v5 }
 0x127   :  { %672 = vst.msk [vmem:[%s1457_s7 + $0x8] sm:$0xff] %vm670_vm1, %v645_v48 }
 0x129   :  { %v576_v7 = vpop.xlane.xlu2 %575  ;;  %v546_v8 = vpop.xlane.xlu1 %545 }
 0x12a   :  { %v628_v9 = vadd.f32 %v576_v7, %v196_v28  ;;  %v618_v10 = vadd.f32 %v546_v8, %v1220_v37  ;;  %v561_v11 = vpop.xlane.xlu0 %560 }
 0x12b   :  { %v623_v12 = vadd.f32 %v561_v11, %v1260_v25 }
 0x12c   :  { %v656_v14 = vadd.f32 %v1299_v58, %v628_v9  ;;  %v646_v15 = vadd.f32 %v1299_v58, %v618_v10 }
 0x12d   :  { %v651_v16 = vadd.f32 %v1299_v58, %v623_v12 }
 0x12e   :  { %683 = vst.msk [vmem:[%s1457_s7 + $0x60] sm:$0xff] %vm670_vm1, %v656_v14 }
 0x12f   :  { %673 = vst.msk [vmem:[%s1457_s7 + $0x10] sm:$0xff] %vm670_vm1, %v646_v15 }
 0x130   :  { %678 = vst.msk [vmem:[%s1457_s7 + $0x38] sm:$0xff] %vm670_vm1, %v651_v16 }
 0x131   :  { %v603_v37 = vpop.xlane.xlu2 %602  ;;  %v564_v17 = vpop.xlane.xlu1 %563 }
 0x132   :  { %v637_v18 = vadd.f32 %v603_v37, %v223_v53  ;;  %v624_v19 = vadd.f32 %v564_v17, %v1264_v31  ;;  %v579_v20 = vpop.xlane.xlu0 %578 }
 0x133   :  { %v629_v21 = vadd.f32 %v579_v20, %v199_v44 }
 0x134   :  { %v665_v22 = vadd.f32 %v1299_v58, %v637_v18  ;;  %v652_v24 = vadd.f32 %v1299_v58, %v624_v19 }
 0x135   :  { %v657_v25 = vadd.f32 %v1299_v58, %v629_v21 }
 0x136   :  { %692 = vst.msk [vmem:[%s1457_s7 + $0xa8] sm:$0xff] %vm670_vm1, %v665_v22 }
 0x137   :  { %679 = vst.msk [vmem:[%s1457_s7 + $0x40] sm:$0xff] %vm670_vm1, %v652_v24 }
 0x138   :  { %684 = vst.msk [vmem:[%s1457_s7 + $0x68] sm:$0xff] %vm670_vm1, %v657_v25 }
 0x139   :  { %v549_v26 = vpop.xlane.xlu2 %548  ;;  %v582_v27 = vpop.xlane.xlu1 %581 }
 0x13a   :  { %v619_v29 = vadd.f32 %v549_v26, %v1243_v6  ;;  %v630_v30 = vadd.f32 %v582_v27, %v202_v45  ;;  %v606_v31 = vpop.xlane.xlu0 %605 }
 0x13b   :  { %v638_v32 = vadd.f32 %v606_v31, %v226_v52 }
 0x13c   :  { %v647_v33 = vadd.f32 %v1299_v58, %v619_v29  ;;  %v658_v35 = vadd.f32 %v1299_v58, %v630_v30 }
 0x13d   :  { %v666_v36 = vadd.f32 %v1299_v58, %v638_v32 }
 0x13e   :  { %674 = vst.msk [vmem:[%s1457_s7 + $0x18] sm:$0xff] %vm670_vm1, %v647_v33 }
 0x13f   :  { %685 = vst.msk [vmem:[%s1457_s7 + $0x70] sm:$0xff] %vm670_vm1, %v658_v35 }
 0x140   :  { %693 = vst.msk [vmem:[%s1457_s7 + $0xb0] sm:$0xff] %vm670_vm1, %v666_v36 }
 0x141   :  { %v567_v6 = vpop.xlane.xlu2 %566  ;;  %v555_v38 = vpop.xlane.xlu1 %554 }
 0x142   :  { %v625_v40 = vadd.f32 %v567_v6, %v1274_v41  ;;  %v621_v23 = vadd.f32 %v555_v38, %v1252_v13  ;;  %v552_v43 = vpop.xlane.xlu0 %551 }
 0x143   :  { %v620_v44 = vadd.f32 %v552_v43, %v1233_v55 }
 0x144   :  { %v653_v28 = vadd.f32 %v1299_v58, %v625_v40  ;;  %v649_v45 = vadd.f32 %v1299_v58, %v621_v23 }
 0x145   :  { %v648_v51 = vadd.f32 %v1299_v58, %v620_v44 }
 0x146   :  { %680 = vst.msk [vmem:[%s1457_s7 + $0x48] sm:$0xff] %vm670_vm1, %v653_v28 }
 0x147   :  { %676 = vst.msk [vmem:[%s1457_s7 + $0x28] sm:$0xff] %vm670_vm1, %v649_v45 }
 0x148   :  { %675 = vst.msk [vmem:[%s1457_s7 + $0x20] sm:$0xff] %vm670_vm1, %v648_v51 }
 0x149   :  { %v585_v55 = vpop.xlane.xlu2 %584  ;;  %v573_v13 = vpop.xlane.xlu1 %572 }
 0x14a   :  { %v631_v41 = vadd.f32 %v585_v55, %v1282_v47  ;;  %v627_v52 = vadd.f32 %v573_v13, %v1277_v42  ;;  %v570_v53 = vpop.xlane.xlu0 %569 }
 0x14b   :  { %v626_v59 = vadd.f32 %v570_v53, %v1270_v39 }
 0x14c   :  { %v659_v60 = vadd.f32 %v1299_v58, %v631_v41  ;;  %v655_v61 = vadd.f32 %v1299_v58, %v627_v52 }
 0x14d   :  { %v654_v62 = vadd.f32 %v1299_v58, %v626_v59 }
 0x14e   :  { %686 = vst.msk [vmem:[%s1457_s7 + $0x78] sm:$0xff] %vm670_vm1, %v659_v60 }
 0x14f   :  { %682 = vst.msk [vmem:[%s1457_s7 + $0x58] sm:$0xff] %vm670_vm1, %v655_v61 }
 0x150   :  { %681 = vst.msk [vmem:[%s1457_s7 + $0x50] sm:$0xff] %vm670_vm1, %v654_v62 }
 0x151   :  { %v594_v39 = vpop.xlane.xlu2 %593  ;;  %v591_v42 = vpop.xlane.xlu1 %590 }
 0x152   :  { %v634_v47 = vadd.f32 %v594_v39, %v1288_v50  ;;  %v633_v63 = vadd.f32 %v591_v42, %v1284_v34  ;;  %v588_v0 = vpop.xlane.xlu0 %587 }
 0x153   :  { %v632_v1 = vadd.f32 %v588_v0, %v1280_v46 }
 0x154   :  { %v662_v2 = vadd.f32 %v1299_v58, %v634_v47  ;;  %v661_v3 = vadd.f32 %v1299_v58, %v633_v63 }
 0x155   :  { %v660_v4 = vadd.f32 %v1299_v58, %v632_v1 }
 0x156   :  { %689 = vst.msk [vmem:[%s1457_s7 + $0x90] sm:$0xff] %vm670_vm1, %v662_v2 }
 0x157   :  { %688 = vst.msk [vmem:[%s1457_s7 + $0x88] sm:$0xff] %vm670_vm1, %v661_v3 }
 0x158   :  { %687 = vst.msk [vmem:[%s1457_s7 + $0x80] sm:$0xff] %vm670_vm1, %v660_v4 }
 0x159   :  { %v612_v46 = vpop.xlane.xlu2 %611  ;;  %v609_v34 = vpop.xlane.xlu1 %608 }
 0x15a   :  { %v640_v50 = vadd.f32 %v612_v46, %v1294_v57  ;;  %v639_v5 = vadd.f32 %v609_v34, %v1290_v54  ;;  %v597_v48 = vpop.xlane.xlu0 %596 }
 0x15b   :  { %v635_v7 = vadd.f32 %v597_v48, %v1286_v49 }
 0x15c   :  { %v668_v8 = vadd.f32 %v1299_v58, %v640_v50  ;;  %v667_v9 = vadd.f32 %v1299_v58, %v639_v5 }
 0x15d   :  { %v663_v10 = vadd.f32 %v1299_v58, %v635_v7 }
 0x15e   :  { %695 = vst.msk [vmem:[%s1457_s7 + $0xc0] sm:$0xff] %vm670_vm1, %v668_v8 }
 0x15f   :  { %694 = vst.msk [vmem:[%s1457_s7 + $0xb8] sm:$0xff] %vm670_vm1, %v667_v9 }
 0x160   :  { %690 = vst.msk [vmem:[%s1457_s7 + $0x98] sm:$0xff] %vm670_vm1, %v663_v10 }
 0x162   :  { %v615_v49 = vpop.xlane.xlu0 %614 }
 0x163   :  { %v641_v54 = vadd.f32 %v615_v49, %v1292_v56 }
 0x165   :  { %v669_v57 = vadd.f32 %v1299_v58, %v641_v54 }
 0x167   :  { %696 = vst.msk [vmem:[%s1457_s7 + $0xc8] sm:$0xff] %vm670_vm1, %v669_v57 }

</bundles_post_ra>
